<compile_context>
chip_gen: v5e
topology: v5e:2x2
jax: 0.10.0
libtpu: 0.0.40
codegen_flags: <defaults>
</compile_context>

<pallas_src>
import math

import jax
import jax.numpy as jnp
from jax.experimental import pallas as pl
from jax.experimental.pallas import tpu as pltpu


def _cdiv(a, b):
    return -(-a // b)


# ----------------------------------------------------------------------------
# Generation-aware VMEM limits.
# ----------------------------------------------------------------------------
def _vmem_limits():
    """Returns (vmem_limit_bytes for CompilerParams, per-kernel block budget)."""
    try:
        cap = int(pltpu.get_tpu_info().vmem_capacity_bytes)
    except Exception:
        cap = 64 << 20                      # conservative: v7x per-TensorCore VMEM
    limit = min((cap * 3) // 4, 96 << 20)   # ~96 MiB on v5e/v6e, ~48 MiB on v7x
    budget = (limit * 2) // 3               # headroom for compiler scratch/spills
    return limit, budget


# ----------------------------------------------------------------------------
# Fused kernel: DCT pooling + squeeze-excite MLP + sigmoid + rescale.
# ----------------------------------------------------------------------------
def _fca_fused_kernel(x_ref, w_ref, fc1_ref, fc2_ref, o_ref):
    # x_ref: (bt, C, T) input slab; w_ref: (C, T) f32 DCT filter
    # fc1_ref: (C, Cr) f32; fc2_ref: (Cr, C) f32; o_ref: (bt, C, T) x.dtype
    x = x_ref[...]
    # DCT-weighted pooling over time with f32 accumulation.
    pooled = jnp.sum(x.astype(jnp.float32) * w_ref[...], axis=-1)        # (bt, C)
    # Tiny squeeze-excite MLP (MXU) + sigmoid (EUP).
    h = jnp.maximum(
        jnp.dot(pooled, fc1_ref[...], preferred_element_type=jnp.float32), 0.0)
    g = jax.nn.sigmoid(
        jnp.dot(h, fc2_ref[...], preferred_element_type=jnp.float32))    # (bt, C)
    # Rescale in the input dtype: one multiply, no extra f32 output copy.
    o_ref[...] = (x * g.astype(x.dtype)[:, :, None]).astype(o_ref.dtype)


# ----------------------------------------------------------------------------
# Fallback kernels (only for slabs that cannot fit VMEM): two passes.
# ----------------------------------------------------------------------------
def _fca_pool_gate_kernel(x_ref, w_ref, fc1_ref, fc2_ref, g_ref, acc_ref):
    # Time-tiled DCT pooling with an f32 accumulator; MLP + sigmoid on last tile.
    t = pl.program_id(0)

    @pl.when(t == 0)
    def _init():
        acc_ref[...] = jnp.zeros_like(acc_ref)

    acc_ref[...] += jnp.sum(x_ref[...].astype(jnp.float32) * w_ref[...], axis=-1)

    @pl.when(t == pl.num_programs(0) - 1)
    def _finish():
        h = jnp.maximum(
            jnp.dot(acc_ref[...], fc1_ref[...], preferred_element_type=jnp.float32),
            0.0)
        g = jax.nn.sigmoid(
            jnp.dot(h, fc2_ref[...], preferred_element_type=jnp.float32))
        g_ref[...] = g.astype(g_ref.dtype)        # lane-dense (B, C), x.dtype


def _fca_scale_kernel(x_ref, g_ref, o_ref):
    # o = x * gate; gate is a lane-dense (bt, C) block broadcast in-register.
    o_ref[...] = (x_ref[...] * g_ref[...][:, :, None]).astype(o_ref.dtype)


# ----------------------------------------------------------------------------
# Tile-size heuristics.
# ----------------------------------------------------------------------------
def _pick_fused_batch_tile(B, C, T, itemsize, Cr, budget):
    """Largest bt such that a fused block comfortably fits VMEM, or None."""
    # 2x double-buffered input + 2x double-buffered output in x.dtype,
    # plus ~2 f32 temporaries (upcast copy + product) per element.
    per_batch = C * T * (4 * itemsize + 8)
    fixed = 2 * (C * T + 2 * C * Cr) * 4             # (double-buffered) weights
    avail = budget - fixed
    if avail < per_batch:
        return None                                   # too big -> two-pass fallback
    bt = max(1, min(B, avail // per_batch))
    if B >= 2:
        bt = min(bt, _cdiv(B, 2))                     # >=2 'parallel' blocks (megacore)
    return int(bt)


def _legal_batch_tile(bt, B):
    # Gate blocks are (bt, C): second-to-last dim must be a multiple of 8 or == B.
    if bt >= B or B <= 8:
        return B
    return max(8, (bt // 8) * 8)


def _pick_pool_time_tile(B, C, T, itemsize, Cr, budget):
    fixed = 4 * C * Cr * 4 + 3 * B * C * 4            # weights + accumulator + gate
    per_col = B * C * (2 * itemsize + 8) + 2 * C * 4  # x (double-buf + f32) + w tile
    avail = max(budget - fixed, 0)
    tt = (avail // per_col) // 128 * 128
    # TODO(synk): tile the channel axis as well for extreme B*C that cannot
    #             even fit a 128-wide time tile.
    return int(max(128, min(tt, T)))


def _pick_scale_tiles(B, C, T, itemsize, budget):
    per_elem = 4 * itemsize + 4                       # in + out double-buffered (+slack)

    def fits(bt, tt):
        return bt * C * (tt * per_elem + 2 * itemsize) <= budget

    bt = B
    while bt > 1 and not fits(bt, T):
        bt //= 2
    bt = _legal_batch_tile(bt, B)
    if fits(bt, T):
        return bt, T
    bt = _legal_batch_tile(1, B)
    tt = (budget // max(1, bt * C * per_elem)) // 128 * 128
    return bt, int(max(128, min(tt, T)))


# ----------------------------------------------------------------------------
# Wrapper
# ----------------------------------------------------------------------------
def fca_forward(x, dct_w, fc1_w, fc2_w):
    """x: (B, C, 1, T); dct_w: (C, T); fc1_w: (C//r, C); fc2_w: (C, C//r)."""
    B, C, one, T = x.shape
    assert one == 1, "FCA expects a singleton dim at position -2"
    itemsize = jnp.dtype(x.dtype).itemsize

    x3 = x.reshape(B, C, T)
    dct_w = dct_w.astype(jnp.float32)
    fc1_t = fc1_w.T.astype(jnp.float32)               # (C, Cr)
    fc2_t = fc2_w.T.astype(jnp.float32)               # (Cr, C)
    Cr = fc1_t.shape[1]

    vmem_limit, budget = _vmem_limits()

    def cparams(dims):
        return pltpu.CompilerParams(
            dimension_semantics=dims, vmem_limit_bytes=vmem_limit)

    bt = _pick_fused_batch_tile(B, C, T, itemsize, Cr, budget)
    if bt is not None:
        # ---- Fused path: pooling + MLP + sigmoid + rescale, one HBM read of x.
        out3 = pl.pallas_call(
            _fca_fused_kernel,
            out_shape=jax.ShapeDtypeStruct((B, C, T), x.dtype),
            grid=(_cdiv(B, bt),),
            in_specs=[
                pl.BlockSpec((bt, C, T), lambda b: (b, 0, 0)),   # x slab
                pl.BlockSpec((C, T), lambda b: (0, 0)),          # DCT filter
                pl.BlockSpec((C, Cr), lambda b: (0, 0)),         # fc1^T
                pl.BlockSpec((Cr, C), lambda b: (0, 0)),         # fc2^T
            ],
            out_specs=pl.BlockSpec((bt, C, T), lambda b: (b, 0, 0)),
            compiler_params=cparams(("parallel",)),
            cost_estimate=pl.CostEstimate(
                flops=3 * B * C * T + 4 * B * C * Cr,
                transcendentals=B * C,
                bytes_accessed=2 * B * C * T * itemsize
                + (C * T + 2 * C * Cr) * 4),
        )(x3, dct_w, fc1_t, fc2_t)
        return out3.reshape(B, C, 1, T)

    # ---- Fallback: slab does not fit VMEM -> two passes. --------------------
    # Pass A: time-tiled DCT pooling + MLP + sigmoid -> lane-dense (B, C) gate.
    tt_p = _pick_pool_time_tile(B, C, T, itemsize, Cr, budget)
    gate = pl.pallas_call(
        _fca_pool_gate_kernel,
        out_shape=jax.ShapeDtypeStruct((B, C), x.dtype),
        grid=(_cdiv(T, tt_p),),
        in_specs=[
            pl.BlockSpec((B, C, tt_p), lambda t: (0, 0, t)),
            pl.BlockSpec((C, tt_p), lambda t: (0, t)),
            pl.BlockSpec((C, Cr), lambda t: (0, 0)),
            pl.BlockSpec((Cr, C), lambda t: (0, 0)),
        ],
        out_specs=pl.BlockSpec((B, C), lambda t: (0, 0)),
        scratch_shapes=[pltpu.VMEM((B, C), jnp.float32)],
        compiler_params=cparams(("arbitrary",)),
    )(x3, dct_w, fc1_t, fc2_t)

    # Pass B: tiled, lane-dense elementwise rescale.
    bt_s, tt_s = _pick_scale_tiles(B, C, T, itemsize, budget)
    out3 = pl.pallas_call(
        _fca_scale_kernel,
        out_shape=jax.ShapeDtypeStruct((B, C, T), x.dtype),
        grid=(_cdiv(B, bt_s), _cdiv(T, tt_s)),
        in_specs=[
            pl.BlockSpec((bt_s, C, tt_s), lambda b, t: (b, 0, t)),
            pl.BlockSpec((bt_s, C), lambda b, t: (b, 0)),
        ],
        out_specs=pl.BlockSpec((bt_s, C, tt_s), lambda b, t: (b, 0, t)),
        compiler_params=cparams(("parallel", "parallel")),
        cost_estimate=pl.CostEstimate(
            flops=B * C * T, transcendentals=0,
            bytes_accessed=2 * B * C * T * itemsize + B * C * itemsize),
    )(x3, gate)
    return out3.reshape(B, C, 1, T)


# ----------------------------------------------------------------------------
# DCT filter (mirrors FCA.get_dct_filter with mapper_y = [freq_idx])
# ----------------------------------------------------------------------------
def get_dct_filter(seq_len, in_channels, freq_idx=0):
    t = jnp.arange(seq_len, dtype=jnp.float32)
    filt = jnp.cos(jnp.pi * float(freq_idx) * (t + 0.5) / seq_len) / math.sqrt(seq_len)
    if freq_idx != 0:
        filt = filt * math.sqrt(2.0)
    return jnp.broadcast_to(filt[None, :], (in_channels, seq_len))


# ----------------------------------------------------------------------------
# Pure-JAX reference mirroring the PyTorch forward
# ----------------------------------------------------------------------------
def fca_reference(x, dct_w, fc1_w, fc2_w):
    s = jnp.sum(x[:, :, 0, :] * dct_w[None, :, :], axis=-1)   # (B, C)
    h = jnp.maximum(s @ fc1_w.T, 0.0)
    gate = jax.nn.sigmoid(h @ fc2_w.T)                        # (B, C)
    return x * gate[:, :, None, None]


if __name__ == "__main__":
    B, C, T = 2, 16, 62          # batch, in_channels, seq_len (module default 62)
    reduction_rate = 4
    freq_idx = 0
    Cr = C // reduction_rate

    key = jax.random.PRNGKey(0)
    kx, k1, k2 = jax.random.split(key, 3)
    x = jax.random.normal(kx, (B, C, 1, T), dtype=jnp.float32)

    # PyTorch-style Linear(bias=False) init: U(-1/sqrt(fan_in), 1/sqrt(fan_in))
    b1 = 1.0 / math.sqrt(C)
    fc1_w = jax.random.uniform(k1, (Cr, C), jnp.float32, -b1, b1)
    b2 = 1.0 / math.sqrt(Cr)
    fc2_w = jax.random.uniform(k2, (C, Cr), jnp.float32, -b2, b2)

    dct_w = get_dct_filter(T, C, freq_idx)                    # (C, T), non-trainable

    out = fca_forward(x, dct_w, fc1_w, fc2_w)
    out = jax.block_until_ready(out)

    ref = fca_reference(x, dct_w, fc1_w, fc2_w)
    assert out.shape == x.shape
    assert jnp.allclose(out, ref, atol=1e-5, rtol=1e-5)

    print("KERNEL_OK")
</pallas_src>

<mosaic_0001>
module attributes {stable_mosaic.version = 11 : i64} {
  func.func @_fca_fused_kernel(%arg0: i32, %arg1: memref<1x16x62xf32, #tpu.memory_space<vmem>>, %arg2: memref<16x62xf32, #tpu.memory_space<vmem>>, %arg3: memref<16x4xf32, #tpu.memory_space<vmem>>, %arg4: memref<4x16xf32, #tpu.memory_space<vmem>>, %arg5: memref<1x16x62xf32, #tpu.memory_space<vmem>>) attributes {dimension_semantics = [#tpu.dimension_semantics<parallel>], iteration_bounds = array<i64: 2>, scalar_prefetch = 0 : i64, scratch_operands = 0 : i64, tpu.core_type = #tpu.core_type<tc>, window_params = [{transform_indices = @transform_0, window_bounds = array<i64: 1, 16, 62>}, {pipeline_mode = #tpu.pipeline_mode<synchronous>, transform_indices = @transform_1, window_bounds = array<i64: 16, 62>}, {pipeline_mode = #tpu.pipeline_mode<synchronous>, transform_indices = @transform_2, window_bounds = array<i64: 16, 4>}, {pipeline_mode = #tpu.pipeline_mode<synchronous>, transform_indices = @transform_3, window_bounds = array<i64: 4, 16>}, {transform_indices = @transform_4, window_bounds = array<i64: 1, 16, 62>}]} {
    %c0 = arith.constant 0 : index
    %c0_0 = arith.constant 0 : index
    %c0_1 = arith.constant 0 : index
    %0 = vector.load %arg1[%c0, %c0_0, %c0_1] : memref<1x16x62xf32, #tpu.memory_space<vmem>>, vector<1x16x62xf32>
    %c0_2 = arith.constant 0 : index
    %c0_3 = arith.constant 0 : index
    %1 = vector.load %arg2[%c0_2, %c0_3] : memref<16x62xf32, #tpu.memory_space<vmem>>, vector<16x62xf32>
    %2 = vector.shape_cast %1 : vector<16x62xf32> to vector<1x16x62xf32>
    %3 = arith.mulf %0, %2 : vector<1x16x62xf32>
    %cst = arith.constant dense<0.000000e+00> : vector<1x16xf32>
    %4 = vector.multi_reduction <add>, %3, %cst [2] : vector<1x16x62xf32> to vector<1x16xf32>
    %c0_4 = arith.constant 0 : index
    %c0_5 = arith.constant 0 : index
    %5 = vector.load %arg3[%c0_4, %c0_5] : memref<16x4xf32, #tpu.memory_space<vmem>>, vector<16x4xf32>
    %cst_6 = arith.constant dense<0.000000e+00> : vector<1x4xf32>
    %6 = tpu.matmul %4, %5, %cst_6 {dimension_numbers = #tpu.dot_dimension_numbers<[1], [0], [0], [1], [0, 0, 1, 1], [], []>} : vector<1x16xf32>, vector<16x4xf32>, vector<1x4xf32> -> vector<1x4xf32>
    %cst_7 = arith.constant 0.000000e+00 : f32
    %7 = vector.broadcast %cst_7 : f32 to vector<1x4xf32>
    %8 = arith.maximumf %6, %7 : vector<1x4xf32>
    %c0_8 = arith.constant 0 : index
    %c0_9 = arith.constant 0 : index
    %9 = vector.load %arg4[%c0_8, %c0_9] : memref<4x16xf32, #tpu.memory_space<vmem>>, vector<4x16xf32>
    %cst_10 = arith.constant dense<0.000000e+00> : vector<1x16xf32>
    %10 = tpu.matmul %8, %9, %cst_10 {dimension_numbers = #tpu.dot_dimension_numbers<[1], [0], [0], [1], [0, 0, 1, 1], [], []>} : vector<1x4xf32>, vector<4x16xf32>, vector<1x16xf32> -> vector<1x16xf32>
    %11 = arith.negf %10 : vector<1x16xf32>
    %12 = math.exp %11 : vector<1x16xf32>
    %cst_11 = arith.constant 1.000000e+00 : f32
    %13 = vector.broadcast %cst_11 : f32 to vector<1x16xf32>
    %14 = arith.addf %13, %12 : vector<1x16xf32>
    %15 = arith.divf %13, %14 : vector<1x16xf32>
    %16 = vector.shape_cast %15 : vector<1x16xf32> to vector<1x16x1xf32>
    %17 = vector.broadcast %16 : vector<1x16x1xf32> to vector<1x16x62xf32>
    %18 = arith.mulf %0, %17 : vector<1x16x62xf32>
    %c0_12 = arith.constant 0 : index
    %c0_13 = arith.constant 0 : index
    %c0_14 = arith.constant 0 : index
    %19 = vector.load %arg5[%c0_12, %c0_13, %c0_14] : memref<1x16x62xf32, #tpu.memory_space<vmem>>, vector<1x16x62xf32>
    tpu.vector_store %arg5[%c0_12, %c0_13, %c0_14], %18 {strides = array<i32>} : memref<1x16x62xf32, #tpu.memory_space<vmem>>, vector<1x16x62xf32>,
    return
  }
  func.func @transform_0(%arg0: i32) -> (i32, i32, i32) {
    %c0_i32 = arith.constant 0 : i32
    %c0_i32_0 = arith.constant 0 : i32
    %c0_i32_1 = arith.constant 0 : i32
    return %arg0, %c0_i32, %c0_i32_0 : i32, i32, i32
  }
  func.func @transform_1(%arg0: i32) -> (i32, i32) {
    %c0_i32 = arith.constant 0 : i32
    %c0_i32_0 = arith.constant 0 : i32
    %c0_i32_1 = arith.constant 0 : i32
    return %c0_i32, %c0_i32_0 : i32, i32
  }
  func.func @transform_2(%arg0: i32) -> (i32, i32) {
    %c0_i32 = arith.constant 0 : i32
    %c0_i32_0 = arith.constant 0 : i32
    %c0_i32_1 = arith.constant 0 : i32
    return %c0_i32, %c0_i32_0 : i32, i32
  }
  func.func @transform_3(%arg0: i32) -> (i32, i32) {
    %c0_i32 = arith.constant 0 : i32
    %c0_i32_0 = arith.constant 0 : i32
    %c0_i32_1 = arith.constant 0 : i32
    return %c0_i32, %c0_i32_0 : i32, i32
  }
  func.func @transform_4(%arg0: i32) -> (i32, i32, i32) {
    %c0_i32 = arith.constant 0 : i32
    %c0_i32_0 = arith.constant 0 : i32
    %c0_i32_1 = arith.constant 0 : i32
    return %arg0, %c0_i32, %c0_i32_0 : i32, i32, i32
  }
}

</mosaic_0001>

<bundles_post_ra>
// kernel: tpu_custom_call.1
= control target key start
LH: loop header
LB: loop body
LE: loop exit
PB: predicated region body
PF: predicated region fallthrough
CT: control target
= control target key end

     0   :  { %9 = vsyncpa [#allocation3], 0  ;;  %s778_s0 = inlined_call_operand.hbm [shape: f32[2,16,62], index: 0, kind: input, shape index: {}]   ;;  %s779_s1 = inlined_call_operand.vmem [shape: f32[16,62], index: 1, kind: input, shape index: {}]   ;;  %s780_s2 = inlined_call_operand.vmem [shape: f32[16,4], index: 2, kind: input, shape index: {}]   ;;  %s781_s3 = inlined_call_operand.vmem [shape: f32[4,16], index: 3, kind: input, shape index: {}]   ;;  %s782_s4 = inlined_call_operand.hbm [shape: f32[2,16,62], index: 4, kind: output, shape index: {}]  }
   0x1   :  { %11 = vsyncpa [#allocation3 + $0x1], 0 }
   0x2   :  { %12 = vsyncpa [#allocation4], 0 }
   0x3   :  { %14 = vsyncpa [#allocation4 + $0x1], 0  ;;  %s624_s15 = smov 0   ;;  %s626_s16 = smov 0  }
   0x4   :  { %s628_s17 = smov 0   ;;  %s630_s18 = smov 0  }
   0x5 LB: > { %s645_s19 = sadd.s32 4294967295, %s593_s18   ;;  %s420_s20 = sadd.s32 4294967294, %s593_s18   ;;  %s593_s18 = sphi %s630_s18, %s792_s18   ;;  %s589_s17 = sphi %s628_s17, %s791_s17   ;;  %s585_s16 = sphi %s626_s16, %s790_s16   ;;  %s581_s15 = sphi %s624_s15, %s789_s15  }
   0x6   : > { %s649_s21 = sadd.s32 1, %s593_s18   ;;  %s27_s22 = sadd.s32 1, %s589_s17 }
   0x7   : > { %s24_s23 = ssub.s32 %s593_s18, %s649_s21  ;;  %p34_p0 = scmp.ne.s32.totalorder %s589_s17, %s585_s16 }
   0x8   : > { %p25_p1 = scmp.eq.s32.totalorder %s24_s23, 0  ;;  %p35_p2 = scmp.eq.s32.totalorder %s593_s18, 0 }
   0x9   : > { %p40_p3 = scmp.ne.s32.totalorder %s585_s16, %s581_s15  ;;  %p41_p4 = scmp.eq.s32.totalorder %s645_s19, 0 }
   0xa   : > { %s661_s24 = scalar_select %p25_p1, %s589_s17, %s27_s22  }
   0xb   : > { %p663_p5 = por %p35_p2, %p34_p0  ;;  %p667_p6 = por %p41_p4, %p40_p3 }
   0xc   : > { %p127_p7 = scmp.eq.s32.totalorder %s645_s19, 1  ;;  %p133_p8 = scmp.eq.s32.totalorder %s420_s20, 1 }
   0xd   : > { %p452_p10 = scmp.lt.s32.totalorder %s593_s18, 2  ;;  %s162_s29 = sand.u32 1, %s589_s17  }
   0xe   : > { %p674_p11 = por %p127_p7, %p34_p0  ;;  %p678_p12 = por %p133_p8, %p40_p3 }
   0xf   : > { %s438_s30 = sshll.u32 %s593_s18, 4  ;;  %s423_s5 = sshll.u32 %s162_s29, 4 }
  0x10   : > { %s171_s8 = scalar_lea.hbm %s778_s0, %s438_s30  ;;  %s166_s10 = scalar_lea.vmem [#allocation2], %s423_s5 }
  0x11   : > { %s172_s9 = sshll.u32 %s171_s8, 4  ;;  %s174_s11 = sshll.u32 %s166_s10, 4  ;;  %s173_s9 = int_to_ptr.hbm [resolvable:$true] %s172_s9  ;;  %s175_s11 = int_to_ptr.vmem [resolvable:$true] %s174_s11 }
  0x12   : > { %p689_p13 = pnand %p452_p10, %p663_p5  ;;  %p426_p0 = scmp.ge.s32.totalorder %s593_s18, 1 }
  0x13   : > { %p182_p1 = scmp.lt.s32.totalorder %s593_s18, 3  ;;  %s163_s13 = scalar_lea.sflag [#allocation3], %s162_s29 }
  0x14   : > { %s497_s14 = sshra.s32 %s173_s9, 4  ;;  %p501_p3 = pneg %p689_p13  ;;  %s498_s14 = int_to_ptr.hbm [resolvable:$true] %s497_s14 }
  0x15   : > { %s499_s20 = scalar_lea.hbm %s498_s14, 16  ;;  %s504_s25 = scalar_lea.hbm %s778_s0, 32 }
  0x16   : > { %p500_p2 = scmp.ne.s32.totalorder %s498_s14, %s499_s20  ;;  %p505_p5 = scmp.lt.s32.totalorder %s498_s14, %s778_s0 }
  0x17   : > { %p506_p8 = scmp.lt.s32.totalorder %s504_s25, %s499_s20 }
  0x18   : > { %p502_p4 = pnand %p501_p3, %p500_p2 }
  0x19   : > { %p507_p10 = por %p506_p8, %p505_p5 }
  0x1a   : > { %p503_p7 = pneg %p502_p4 }
  0x1c   : > { %p508_p9 = pnand %p507_p10, %p503_p7 }
  0x1e   : > { %511 = shalt.err (!%p508_p9)
}
  0x1f   : > { %s595_s29 = smov 128   ;;  %s596_s6 = smov 8  }
  0x20   : > { %447 = dma.hbm_to_vmem [thread:$0]  (!%p689_p13), %s173_s9, 256, %s175_s11, %s163_s13, %s595_s29, %s595_s29, %s596_s6  }
  0x21   : > { %p183_p2 = pnand %p426_p0, %p182_p1 }
  0x22   : > { %s710_s7 = sand.u32 (!%p183_p2), 1, %s585_s16  }
  0x23   : > { %186 = sbr.rel (%p183_p2) target bundleno = 594 (0x252), region = 36  ;;  %s427_s8 = sshll.u32 (!%p183_p2), %s710_s7, 4 }
  0x24   : > { %s189_s10 = scalar_lea.sflag (!%p183_p2), [#allocation3], %s710_s7  ;;  %s192_s14 = scalar_lea.vmem (!%p183_p2), [#allocation2], %s427_s8 }
  0x28   : > { %572 = dma.done.wait (%p667_p6), %s189_s10, 256  }
  0x29   : > { %574 = vsyncadd (%p667_p6), %s189_s10, 4294967040  ;;  %v218_v0 = vld [vmem:[%s192_s14] sm:$0xff]  ;;  %vm224_vm0 = vcmask 506880   ;;  %v723_v3 = vld [vmem:[%s192_s14 + $0x8] sm:$0xff]  ;;  %v235_v10 = vlaneseq  ;;  %vm240_vm1 = vcmask 130112   ;;  %vm242_vm2 = vcmask 130048  }
  0x2a   : > { %v220_v1 = vld [vmem:[%s779_s1] sm:$0xff]  ;;  %v221_v4 = vld [vmem:[%s779_s1 + $0x8] sm:$0xff]  ;;  %vm271_vm3 = vcmask 1043456   ;;  %vm267_vm4 = vcmask 31744   ;;  %s217_s5 = scalar_lea.vmem [#allocation5], %s427_s8  ;;  %s439_s29 = sshll.u32 %s645_s19, 4 }
  0x2b   : > { %v222_v2 = vmul.f32 %v220_v1, %v218_v0  ;;  %v223_v6 = vmul.f32 %v221_v4, %v723_v3  ;;  %v232_v8 = vld [vmem:[%s780_s2 + $0x8] sm:$0xff]  ;;  %v231_v9 = vld [vmem:[%s780_s2] sm:$0xff]  ;;  %v236_v12 = vand.u32 127, %v235_v10  ;;  %v316_v21 = vshrl.u32 %v235_v10, 7  ;;  %s343_s14 = scalar_lea.hbm %s782_s4, %s439_s29  ;;  %s344_s9 = sshll.u32 %s217_s5, 4  ;;  %s345_s9 = int_to_ptr.vmem [resolvable:$true] %s344_s9 }
  0x2c   : > { %259 = vmatpush.msra.mxu0 %v232_v8  ;;  %v266_v18 = vld [vmem:[%s781_s3] sm:$0xf]  ;;  %s346_s11 = sshll.u32 %s343_s14, 4  ;;  %s332_s12 = scalar_lea.sflag [#allocation4], %s710_s7  ;;  %s347_s11 = int_to_ptr.hbm [resolvable:$true] %s346_s11 }
  0x2d   : > { %v225_v5 = vsel %vm224_vm0, %v222_v2, 0.0  ;;  %v228_v7 = vsel %vm224_vm0, %v223_v6, 0.0  ;;  %v238_v13 = vadd.s32 4294967288, %v236_v12  ;;  %430 = vmatpush.msk.msra.mxu1 %vm271_vm3, %v266_v18  ;;  %490 = vset.pattern.permute.xlu1 %v316_v21  ;;  %v323_v22 = vadd.s32 8, %v316_v21  ;;  %s541_s13 = sshra.s32 %s347_s11, 4  ;;  %s547_s20 = scalar_lea.hbm %s782_s4, 32  ;;  %s542_s13 = int_to_ptr.hbm [resolvable:$true] %s541_s13 }
  0x2e   : > { %226 = vadd.xlane.f32.xlu0 %v225_v5  ;;  %260 = vmatpush.msra.mxu0 %v231_v9  ;;  %s543_s8 = scalar_lea.hbm %s542_s13, 16  ;;  %p548_p0 = scmp.lt.s32.totalorder %s542_s13, %s782_s4 }
  0x2f   : > { %492 = vset.pattern.permute.xlu0 %v323_v22  ;;  %p544_p6 = scmp.ne.s32.totalorder %s542_s13, %s543_s8  ;;  %p549_p1 = scmp.lt.s32.totalorder %s547_s20, %s543_s8 }
  0x31   : > { %p545_p9 = pnand %p544_p6, %p674_p11  ;;  %p550_p3 = por %p549_p1, %p548_p0 }
  0x33   : > { %p546_p13 = pneg %p545_p9 }
  0x35   : > { %p551_p4 = pnand %p550_p3, %p546_p13 }
  0x36   : > { %229 = vadd.xlane.f32.xlu0 %v228_v7 }
  0xa1   : > { %v227_v11 = vpop.xlane.xlu0 %226 }
  0xa2   : > { %v237_v15 = vperm.slane %v227_v11, %v236_v12 }
  0xa9   : > { %v230_v14 = vpop.xlane.xlu0 %229 }
  0xaa   : > { %v239_v16 = vperm.slane %v230_v14, %v238_v13 }
  0xac   : > { %v241_v17 = vsel %vm240_vm1, %v239_v16, %v237_v15 }
  0xad   : > { %429 = vmatmul.msk.f32.vlgmr.msra.gmra.mxu0 %vm242_vm2, %v241_v17 }
 0x12a   : > { %v262_v19 = vpop.f32.mrf.mxu0 }
 0x12b   : > { %v265_v20 = vmax.f32 %v262_v19, 0.0 }
 0x12d   : > { %431 = vmatmul.msk.f32.vlgmr.msra.gmra.mxu1 %vm267_vm4, %v265_v20 }
 0x1aa   : > { %v292_v23 = vpop.f32.mrf.mxu1 }
 0x1ab   : > { %v432_v24 = vmul.f32 -1.442695, %v292_v23 }
 0x1ad   : > { %493 = vpow2.f32 %v432_v24 }
 0x1b3   : > { %v494_v25 = vpop.eup %493 }
 0x1b4   : > { %v298_v26 = vadd.f32 1.0, %v494_v25 }
 0x1b6   : > { %495 = vrcp.f32 %v298_v26  ;;  %v310_v30 = vand.u32 2147483648, %v298_v26  ;;  %v308_v32 = vand.u32 2147483647, %v298_v26  ;;  %vm304_vm6 = vweird.f32 %v298_v26 }
 0x1b8   : > { %v311_v34 = vor.u32 1.1754944e-38, %v310_v30  ;;  %vm309_vm8 = vcmp.eq.f32.partialorder %v308_v32, 8.507059e+37 }
 0x1bc   : > { %v496_v27 = vpop.eup %495 }
 0x1bd   : > { %v300_v28 = vmul.f32 %v496_v27, %v298_v26  ;;  %vm305_vm5 = vweird.f32 %v496_v27 }
 0x1be   : > { %vm306_vm7 = vmor %vm304_vm6, %vm305_vm5 }
 0x1bf   : > { %v301_v29 = vsub.f32 1.0, %v300_v28 }
 0x1c1   : > { %v302_v31 = vmul.f32 %v496_v27, %v301_v29 }
 0x1c3   : > { %v303_v33 = vadd.f32 %v496_v27, %v302_v31 }
 0x1c5   : > { %v307_v35 = vsel %vm306_vm7, %v496_v27, %v303_v33 }
 0x1c6   : > { %v312_v36 = vsel %vm309_vm8, %v311_v34, %v307_v35 }
 0x1c7   : > { %v314_v37 = vperm.slane %v312_v36, 0 }
 0x1c9   : > { %319 = vperm.xlu1 %490, %v314_v37  }
 0x1d1   : > { %491 = vset.pattern.permute.xlu1 %v323_v22 }
 0x1d9   : > { %325 = vperm.xlu1 %491, %v314_v37  }
 0x23b   : > { %v320_v38 = vpop.permute.xlu1 %319 }
 0x23c   : > { %v327_v39 = vmul.f32 %v320_v38, %v218_v0 }
 0x23e   : > { %329 = vst.msk [vmem:[%s217_s5] sm:$0xff] %vm224_vm0, %v327_v39 }
 0x24b   : > { %v326_v40 = vpop.permute.xlu1 %325 }
 0x24c   : > { %v328_v41 = vmul.f32 %v326_v40, %v723_v3 }
 0x24e   : > { %330 = vst.msk [vmem:[%s217_s5 + $0x8] sm:$0xff] %vm224_vm0, %v328_v41 }
 0x24f   : > { %554 = shalt.err (!%p551_p4)
}
 0x250   : > { %s597_s7 = smov 128   ;;  %s598_s25 = smov 8  }
 0x251   : > { %442 = dma.vmem_to_hbm [thread:$0]  (%p674_p11), %s345_s9, 256, %s347_s11, %s332_s12, %s597_s7, %s597_s7, %s598_s25  }
 0x252 PF: > { %s361_s30 = sand.u32 1, %s581_s15   ;;  %p788_p7 = scmp.ge.s32.totalorder %s593_s18, 2 }
 0x253   : > { %s362_s5 = scalar_lea.sflag [#allocation4], %s361_s30 }
 0x254   : > { %p449_p5 = pnand %p788_p7, %p678_p12 }
 0x256   : > { %p450_p8 = pneg %p449_p5 }
 0x258   : > { %576 = dma.done.wait (%p450_p8), %s362_s5, 256  }
 0x259   : > { %578 = vsyncadd (%p450_p8), %s362_s5, 4294967040  ;;  %p17_p10 = scmp.ge.s32.totalorder %s649_s21, 4   ;;  %s789_s15 = smov %s585_s16 }
 0x25a   : > { %s790_s16 = smov %s589_s17  ;;  %s791_s17 = smov %s661_s24 }
 0x25b   : > { %s792_s18 = smov %s649_s21  ;;  %19 = sbr.rel (!%p17_p10) target bundleno = 5 (0x5), region = 81 }
 0x260   :  { %368 = vsyncpa [#allocation3], 1 }
 0x261   :  { %370 = vsyncpa [#allocation3 + $0x1], 1 }
 0x262   :  { %371 = vsyncpa [#allocation4], 1 }
 0x263   :  { %373 = vsyncpa [#allocation4 + $0x1], 1 }

</bundles_post_ra>
